<compile_context>
chip_gen: v7x
topology: tpu7x:2x2x1
jax: 0.10.0
libtpu: 0.0.40
codegen_flags: <defaults>
</compile_context>

<pallas_src>
import collections
import functools
import hashlib

import numpy as np
import jax
import jax.numpy as jnp
from jax.experimental import pallas as pl
from jax.experimental.pallas import tpu as pltpu

N_PAD = 128  # padded node/color dimension (lane-aligned); supports graphs up to 128 nodes


def _round_up(x, m):
    return ((x + m - 1) // m) * m


# ----------------------------------------------------------------------------
# Kernel 1: batched WL neighbor-color counting.
#   grid axis b = candidate (child) index
#   colors_ref : (1, 1, N_PAD) int32   this candidate's color vector (one row)
#   a_ref      : (ROWS, N_PAD) bf16    first ROWS rows of the padded 0/1 adjacency
#   o_ref      : (1, ROWS, N_PAD) f32  counts[i, c] = #{ neighbors j of i : colors[j]=c }
# The one-hot is built on the VPU from the color row; the contraction is
# A . onehot^T (contracting lane dims of both operands) so no transpose is
# materialized.  0/1 operands are exact in bf16; accumulation is f32.
# ----------------------------------------------------------------------------
def _wl_counts_kernel(colors_ref, a_ref, o_ref):
    col = colors_ref[0]                                             # (1, N_PAD) int32
    cid = jax.lax.broadcasted_iota(jnp.int32, (N_PAD, N_PAD), 0)    # cid[c, j] = c
    onehot_t = (col == cid).astype(jnp.bfloat16)                    # onehot_t[c, j] = [colors[j] == c]
    counts = jax.lax.dot_general(                                   # counts[i, c] = sum_j A[i,j] * onehot_t[c,j]
        a_ref[...], onehot_t,
        (((1,), (1,)), ((), ())),
        preferred_element_type=jnp.float32)
    o_ref[0] = counts


@functools.lru_cache(maxsize=None)
def _wl_counts_call(b_pad, rows):
    return jax.jit(pl.pallas_call(
        _wl_counts_kernel,
        out_shape=jax.ShapeDtypeStruct((b_pad, rows, N_PAD), jnp.float32),
        grid=(b_pad,),
        in_specs=[pl.BlockSpec((1, 1, N_PAD), lambda b: (b, 0, 0)),
                  pl.BlockSpec((rows, N_PAD), lambda b: (0, 0))],
        out_specs=pl.BlockSpec((1, rows, N_PAD), lambda b: (b, 0, 0)),
        compiler_params=pltpu.CompilerParams(
            dimension_semantics=("parallel",)),   # v7x: candidates split across both TCs
    ))


# ----------------------------------------------------------------------------
# Kernel 2: fused canonical relabelling  out = P @ A @ P^T  with P built in-kernel
# from the canonical color vector (P[c, i] = [colors[i] == c]).  Second product is
# a transpose-free dot_general contracting the lane dims.  Full f32 so arbitrary
# edge weights in A are preserved exactly (P is exactly 0/1).
# ----------------------------------------------------------------------------
def _relabel_kernel(colors_ref, a_ref, o_ref):
    col = colors_ref[...]                                           # (1, N_PAD) int32
    rows = o_ref.shape[0]
    p_rows = (col == jax.lax.broadcasted_iota(jnp.int32, (rows, N_PAD), 0)).astype(jnp.float32)
    p_full = (col == jax.lax.broadcasted_iota(jnp.int32, (N_PAD, N_PAD), 0)).astype(jnp.float32)
    pa = jnp.dot(p_rows, a_ref[...], preferred_element_type=jnp.float32)      # (rows, N_PAD) = P @ A
    o_ref[...] = jax.lax.dot_general(                                          # (P A) @ P^T, no transpose
        pa, p_full, (((1,), (1,)), ((), ())),
        preferred_element_type=jnp.float32)


@functools.lru_cache(maxsize=None)
def _relabel_call(rows):
    # No grid: full arrays live in VMEM, no single-step pipeline overhead.
    return jax.jit(pl.pallas_call(
        _relabel_kernel,
        out_shape=jax.ShapeDtypeStruct((rows, N_PAD), jnp.float32),
    ))


def _dense_rank(rows):
    """Dense lexicographic rank of the rows of an int matrix -> colors 0..k-1."""
    _, inv = np.unique(rows, axis=0, return_inverse=True)
    return inv.astype(np.int64)


# ----------------------------------------------------------------------------
# WLRefiner: color refinement to a stable partition, optionally after
# individualizing a vertex.  Multiple candidates are refined in lockstep so each
# WL iteration is ONE batched Pallas launch covering all still-active candidates.
# ----------------------------------------------------------------------------
class WLRefiner:
    def __init__(self, A_sym, n):
        assert n <= N_PAD, "graph larger than N_PAD; raise N_PAD / re-tile"
        self.n = n
        self.rows = max(8, _round_up(n, 8))
        a_rows = np.zeros((self.rows, N_PAD), dtype=np.float32)
        a_rows[:n, :n] = A_sym[:n, :n]
        # 0/1 adjacency is exact in bf16; device-resident once, reused every call.
        self.a_rows = jnp.asarray(a_rows, dtype=jnp.bfloat16)

    def _counts_batch(self, colors_list):
        n, rows = self.n, self.rows
        B = len(colors_list)
        b_pad = max(1, int(pl.next_power_of_2(B)))   # bounded set of compiled shapes
        cols = np.zeros((b_pad, 1, N_PAD), dtype=np.int32)
        for b, c in enumerate(colors_list):
            cols[b, 0, :n] = c
        counts = np.asarray(_wl_counts_call(b_pad, rows)(jnp.asarray(cols), self.a_rows))
        return [np.rint(counts[b, :n, :n]).astype(np.int64) for b in range(B)]

    def refine_batch(self, colors_list, individualize=None):
        n = self.n
        states = []
        for idx, colors in enumerate(colors_list):
            c = np.asarray(colors, dtype=np.int64).copy()
            v = None if individualize is None else individualize[idx]
            if v is not None:
                c[int(v)] = n                     # fresh singleton color
                c = _dense_rank(c[:, None])       # re-compact color ids
            states.append({'colors': c, 'trace': []})

        active = list(range(len(states)))
        while active:
            counts_list = self._counts_batch([states[i]['colors'] for i in active])
            still_active = []
            for i, counts in zip(active, counts_list):
                st = states[i]
                colors = st['colors']
                sig = np.concatenate([colors[:, None], counts], axis=1)
                new_colors = _dense_rank(sig)
                # invariant hash of the sorted signature multiset (trace entry)
                sig_sorted = sig[np.lexsort(sig.T[::-1])]
                h = hashlib.sha1(sig_sorted.astype(np.int64).tobytes()).digest()[:8]
                st['trace'].append(int.from_bytes(h, 'little') & ((1 << 63) - 1))
                stable = len(np.unique(new_colors)) == len(np.unique(colors))
                st['colors'] = new_colors
                if not stable:
                    still_active.append(i)
            active = still_active

        return [(st['colors'], np.asarray(st['trace'], dtype=np.int64)) for st in states]

    def __call__(self, colors, individualize=None):
        (out,) = self.refine_batch([colors], [individualize])
        return out


# ----------------------------------------------------------------------------
# CanonicalNet_nolearn — forward(x) takes an adjacency matrix and returns a
# relabelled copy whose node ordering is canonical.
# ----------------------------------------------------------------------------
class CanonicalNetNoLearn:

    class Node:
        __slots__ = ('seq', 'colors', 'trace')

        def __init__(self, seq, colors, trace):
            self.seq = seq
            self.colors = colors
            self.trace = trace

        def __lt__(self, other):
            return ((self.stable_hash(self.trace), self.seq)
                    < (self.stable_hash(other.trace), other.seq))

        @staticmethod
        def stable_hash(arr):
            a = np.asarray(arr, dtype=np.int64)
            h = hashlib.sha1(a.tobytes()).digest()[:8]
            return int.from_bytes(h, 'little')

    @staticmethod
    def is_discrete(colors):
        return int(colors.max()) == colors.size - 1

    @staticmethod
    def first_non_singleton_cell(colors):
        _, inv, counts = np.unique(colors, return_inverse=True, return_counts=True)
        for cid, cnt in enumerate(counts):
            if cnt > 1:
                return np.where(inv == cid)[0].tolist()
        return []

    def canonical_colors(self, A):
        n = A.shape[0]
        A_sym = A + A.T
        A_sym = (A_sym > 0).astype(np.float32)            # A[A > 1] = 1
        refiner = WLRefiner(A_sym, n)

        colors_0, _trace_init = refiner(np.zeros(n, dtype=np.int64))
        root = self.Node([], colors_0, ())
        if self.is_discrete(colors_0):
            return colors_0

        # TODO(synk): the individualization-refinement BFS search + SHA1 node
        # ordering is host-side control flow with no Pallas equivalent; only the
        # per-level WL refinements are batched onto the TPU.
        queue = collections.deque([root])
        leaves = []
        while queue:
            node = queue.popleft()
            tgt = self.first_non_singleton_cell(node.colors)
            if not tgt:
                leaves.append(node)
                continue
            cands = [int(v) for v in tgt if v not in node.seq]
            if not cands:
                continue
            # All children of this node refined in lockstep: one Pallas launch
            # per WL iteration covering every still-active candidate.
            results = refiner.refine_batch([node.colors.copy() for _ in cands], cands)
            for v, (colors_child, trace_step) in zip(cands, results):
                child = self.Node(node.seq + [v], colors_child, trace_step)
                if self.is_discrete(colors_child):
                    leaves.append(child)
                else:
                    queue.append(child)
        best = max(leaves)
        return best.colors

    def forward(self, x):
        A = np.asarray(x, dtype=np.float32)
        n = A.shape[0]
        colors = np.asarray(self.canonical_colors(A), dtype=np.int64)
        rows = max(8, _round_up(n, 8))
        # canonical relabelling:  A_canon[colors[i], colors[j]] = A[i, j]
        col_row = np.full((1, N_PAD), N_PAD - 1, dtype=np.int32)   # pad colors land in discarded region
        col_row[0, :n] = colors
        a_pad = np.zeros((N_PAD, N_PAD), dtype=np.float32)
        a_pad[:n, :n] = A
        out = _relabel_call(rows)(jnp.asarray(col_row), jnp.asarray(a_pad))
        return out[:n, :n]

    __call__ = forward


if __name__ == "__main__":
    n = 16
    key = jax.random.PRNGKey(0)
    # deterministic random undirected graph on 16 nodes, no self-loops
    upper = jax.random.bernoulli(key, p=0.4, shape=(n, n)).astype(jnp.float32)
    upper = jnp.triu(upper, k=1)
    A = np.asarray(upper + upper.T, dtype=np.float32)

    net = CanonicalNetNoLearn()
    A_canon = net(A)
    A_canon = jax.block_until_ready(A_canon)

    # sanity: relabelling preserves edge count and symmetry
    assert A_canon.shape == (n, n)
    assert float(jnp.sum(A_canon)) == float(np.sum(A))
    assert bool(jnp.all(jnp.abs(A_canon - A_canon.T) < 1e-6))
    print("KERNEL_OK")
</pallas_src>

<mosaic_0001>
module attributes {stable_mosaic.version = 11 : i64} {
  func.func @_wl_counts_kernel(%arg0: i32, %arg1: memref<1x1x128xi32, #tpu.memory_space<vmem>>, %arg2: memref<16x128xbf16, #tpu.memory_space<vmem>>, %arg3: memref<1x16x128xf32, #tpu.memory_space<vmem>>) attributes {dimension_semantics = [#tpu.dimension_semantics<parallel>], iteration_bounds = array<i64: 1>, scalar_prefetch = 0 : i64, scratch_operands = 0 : i64, tpu.core_type = #tpu.core_type<tc>, window_params = [{transform_indices = @transform_0, window_bounds = array<i64: 1, 1, 128>}, {pipeline_mode = #tpu.pipeline_mode<synchronous>, transform_indices = @transform_1, window_bounds = array<i64: 16, 128>}, {transform_indices = @transform_2, window_bounds = array<i64: 1, 16, 128>}]} {
    %c0 = arith.constant 0 : index
    %c0_0 = arith.constant 0 : index
    %c0_1 = arith.constant 0 : index
    %0 = vector.load %arg1[%c0, %c0_0, %c0_1] : memref<1x1x128xi32, #tpu.memory_space<vmem>>, vector<1x1x128xi32>
    %1 = vector.shape_cast %0 : vector<1x1x128xi32> to vector<1x128xi32>
    %2 = tpu.iota {dimensions = array<i32: 0>} : vector<128x128xi32>
    %3 = vector.broadcast %1 : vector<1x128xi32> to vector<128x128xi32>
    %4 = arith.cmpi eq, %3, %2 : vector<128x128xi32>
    %5 = arith.extui %4 : vector<128x128xi1> to vector<128x128xi32>
    %6 = arith.sitofp %5 : vector<128x128xi32> to vector<128x128xf32>
    %7 = arith.truncf %6 : vector<128x128xf32> to vector<128x128xbf16>
    %c0_2 = arith.constant 0 : index
    %c0_3 = arith.constant 0 : index
    %8 = vector.load %arg2[%c0_2, %c0_3] : memref<16x128xbf16, #tpu.memory_space<vmem>>, vector<16x128xbf16>
    %cst = arith.constant dense<0.000000e+00> : vector<16x128xf32>
    %9 = tpu.matmul %8, %7, %cst {dimension_numbers = #tpu.dot_dimension_numbers<[1], [1], [0], [0], [0, 0, 1, 0], [], []>} : vector<16x128xbf16>, vector<128x128xbf16>, vector<16x128xf32> -> vector<16x128xf32>
    %c0_4 = arith.constant 0 : index
    %c0_5 = arith.constant 0 : index
    %c0_6 = arith.constant 0 : index
    %10 = vector.load %arg3[%c0_4, %c0_5, %c0_6] : memref<1x16x128xf32, #tpu.memory_space<vmem>>, vector<1x16x128xf32>
    %11 = vector.shape_cast %10 : vector<1x16x128xf32> to vector<16x128xf32>
    %12 = vector.shape_cast %9 : vector<16x128xf32> to vector<1x16x128xf32>
    tpu.vector_store %arg3[%c0_4, %c0_5, %c0_6], %12 {strides = array<i32>} : memref<1x16x128xf32, #tpu.memory_space<vmem>>, vector<1x16x128xf32>,
    return
  }
  func.func @transform_0(%arg0: i32) -> (i32, i32, i32) {
    %c0_i32 = arith.constant 0 : i32
    %c0_i32_0 = arith.constant 0 : i32
    %c0_i32_1 = arith.constant 0 : i32
    return %arg0, %c0_i32, %c0_i32_0 : i32, i32, i32
  }
  func.func @transform_1(%arg0: i32) -> (i32, i32) {
    %c0_i32 = arith.constant 0 : i32
    %c0_i32_0 = arith.constant 0 : i32
    %c0_i32_1 = arith.constant 0 : i32
    return %c0_i32, %c0_i32_0 : i32, i32
  }
  func.func @transform_2(%arg0: i32) -> (i32, i32, i32) {
    %c0_i32 = arith.constant 0 : i32
    %c0_i32_0 = arith.constant 0 : i32
    %c0_i32_1 = arith.constant 0 : i32
    return %arg0, %c0_i32, %c0_i32_0 : i32, i32, i32
  }
}

</mosaic_0001>

<bundles_post_ra>
// kernel: tpu_custom_call.1
= control target key start
LH: loop header
LB: loop body
LE: loop exit
PB: predicated region body
PF: predicated region fallthrough
CT: control target
= control target key end

     0   :  { %7 = vsyncpa [#allocation3], 0  ;;  %s400_s0 = inlined_call_operand.hbm [shape: s32[1,1,128], index: 0, kind: input, shape index: {}]   ;;  %s401_s1 = inlined_call_operand.hbm [shape: bf16[16,128], index: 1, kind: input, shape index: {}]   ;;  %s402_s2 = inlined_call_operand.hbm [shape: f32[1,16,128], index: 2, kind: output, shape index: {}]  }
   0x1   :  { %8 = vsyncpa [#allocation6], 0 }
   0x2   :  { %9 = vsyncpa [#allocation4], 0  ;;  %s332_s9 = smov [#allocation2]   ;;  %s333_s11 = smov [#allocation5]  }
   0x3   :  { %s16_s10 = sshll.u32 %s332_s9, 4  ;;  %s25_s12 = sshll.u32 %s333_s11, 4  ;;  %s17_s10 = int_to_ptr.vmem [resolvable:$true] %s16_s10  ;;  %s357_s12 = int_to_ptr.vmem [resolvable:$true] %s25_s12 }
   0x4   :  { %s260_s15 = scalar_lea.hbm %s400_s0, 16 }
   0x5   :  { %p261_p0 = scmp.ne.s32.totalorder %s400_s0, %s260_s15  ;;  %p264_p1 = scmp.lt.u32.totalorder %s260_s15, %s400_s0 }
   0x7   :  { %p266_p2 = pnand %p264_p1, %p261_p0 }
   0x9   :  { %269 = shalt.err (!%p266_p2)
}
   0xa   :  { %s270_s20 = scalar_lea.vmem %s17_s10, 16  ;;  %s274_s21 = scalar_lea.vmem %s17_s10, 32 }
   0xb   :  { %p271_p3 = scmp.ne.s32.totalorder %s17_s10, %s270_s20  ;;  %p275_p4 = scmp.lt.s32.totalorder %s17_s10, %s17_s10 }
   0xc   :  { %p276_p5 = scmp.lt.s32.totalorder %s274_s21, %s270_s20 }
   0xe   :  { %p277_p6 = por %p276_p5, %p275_p4 }
  0x10   :  { %p278_p7 = pnand %p277_p6, %p271_p3 }
  0x12   :  { %281 = shalt.err (!%p278_p7)
}
  0x13   :  { %19 = dma.hbm_to_vmem [thread:$0]  %s400_s0, 16, %s17_s10, [#allocation3]  }
  0x14   :  { %s282_s26 = scalar_lea.hbm %s401_s1, 128 }
  0x15   :  { %p283_p8 = scmp.ne.s32.totalorder %s401_s1, %s282_s26  ;;  %p286_p9 = scmp.lt.u32.totalorder %s282_s26, %s401_s1 }
  0x17   :  { %p288_p10 = pnand %p286_p9, %p283_p8 }
  0x19   :  { %291 = shalt.err (!%p288_p10)
}
  0x1a   :  { %s292_s3 = scalar_lea.vmem %s357_s12, 128  ;;  %p297_p12 = scmp.lt.s32.totalorder %s357_s12, %s357_s12 }
  0x1b   :  { %p293_p11 = scmp.ne.s32.totalorder %s357_s12, %s292_s3  ;;  %p298_p13 = scmp.lt.s32.totalorder %s292_s3, %s292_s3 }
  0x1d   :  { %p299_p0 = por %p298_p13, %p297_p12 }
  0x1f   :  { %p300_p1 = pnand %p299_p0, %p293_p11 }
  0x21   :  { %303 = shalt.err (!%p300_p1)
}
  0x22   :  { %s334_s0 = smov 64   ;;  %s335_s4 = smov 4  }
  0x23   :  { %31 = dma.hbm_to_vmem [thread:$0]  %s401_s1, 128, %s357_s12, [#allocation6], %s334_s0, %s334_s0, %s335_s4  }
  0x24   :  { %326 = dma.done.wait [#allocation3], 16  }
  0x25   :  { %327 = vsyncadd [#allocation3], 4294967280 }
  0x26   :  { %328 = dma.done.wait [#allocation6], 128  }
  0x27   :  { %329 = vsyncadd [#allocation6], 4294967168  ;;  %v40_v0 = vlaneseq  ;;  %v336_v1 = vmov 0.0   ;;  %vm337_vm0 = vmmov 0   ;;  %v186_v4 = vld [vmem:[#allocation2] ss:$0 sm:$0xff] }
  0x28   :  { %229 = vmatprep.subr.bf16.mxu0 %v336_v1  ;;  %245 = vmatprep.mubr.msk.bf16.mxu0 %vm337_vm0, %v336_v1  ;;  %v338_v7 = vmov 1.0|1.0   ;;  %v259_v20 = vld [vmem:[#allocation5] sm:$0xff]   ;;  %s339_s1 = smov [#allocation7]  }
  0x29   :  { %v41_v2 = vshrl.u32 %v40_v0, 7  ;;  %s173_s7 = sshll.u32 %s339_s1, 4  ;;  %s174_s7 = int_to_ptr.vmem [resolvable:$true] %s173_s7 }
  0x2a   :  { %s304_s8 = scalar_lea.vmem %s174_s7, 256  ;;  %p309_p3 = scmp.lt.s32.totalorder %s174_s7, %s174_s7 }
  0x2b   :  { %v42_v3 = vadd.s32 8, %v41_v2  ;;  %vm61_vm1 = vcmp.eq.s32.totalorder %v186_v4, %v41_v2  ;;  %v43_v5 = vadd.s32 16, %v41_v2  ;;  %v44_v6 = vadd.s32 24, %v41_v2  ;;  %p305_p2 = scmp.ne.s32.totalorder %s174_s7, %s304_s8  ;;  %p310_p4 = scmp.lt.s32.totalorder %s304_s8, %s304_s8 }
  0x2c   :  { %v45_v8 = vadd.s32 32, %v41_v2  ;;  %v46_v9 = vadd.s32 40, %v41_v2  ;;  %v47_v10 = vadd.s32 48, %v41_v2  ;;  %v48_v11 = vadd.s32 56, %v41_v2 }
  0x2d   :  { %vm62_vm2 = vcmp.eq.s32.totalorder %v186_v4, %v42_v3  ;;  %vm63_vm4 = vcmp.eq.s32.totalorder %v186_v4, %v43_v5  ;;  %vm64_vm5 = vcmp.eq.s32.totalorder %v186_v4, %v44_v6  ;;  %v49_v12 = vadd.s32 64, %v41_v2  ;;  %p311_p5 = por %p310_p4, %p309_p3 }
  0x2e   :  { %vm204_vm3 = vmpackc.low %vm62_vm2, %vm61_vm1  ;;  %vm65_vm7 = vcmp.eq.s32.totalorder %v186_v4, %v45_v8  ;;  %vm66_vm8 = vcmp.eq.s32.totalorder %v186_v4, %v46_v9  ;;  %vm67_vm10 = vcmp.eq.s32.totalorder %v186_v4, %v47_v10  ;;  %vm68_vm11 = vcmp.eq.s32.totalorder %v186_v4, %v48_v11 }
  0x2f   :  { %230 = vmatpush3.bf16.xpose.msk.msra.mxu0 %vm204_vm3, %v338_v7  ;;  %vm206_vm6 = vmpackc.low %vm64_vm5, %vm63_vm4  ;;  %v50_v13 = vadd.s32 72, %v41_v2  ;;  %vm69_vm13 = vcmp.eq.s32.totalorder %v186_v4, %v49_v12  ;;  %v51_v14 = vadd.s32 80, %v41_v2  ;;  %v52_v15 = vadd.s32 88, %v41_v2  ;;  %p312_p6 = pnand %p311_p5, %p305_p2 }
  0x30   :  { %231 = vmatprep.subr.bf16.mxu0 %v336_v1  ;;  %vm208_vm9 = vmpackc.low %vm66_vm8, %vm65_vm7  ;;  %v53_v16 = vadd.s32 96, %v41_v2  ;;  %v54_v17 = vadd.s32 104, %v41_v2  ;;  %v55_v18 = vadd.s32 112, %v41_v2  ;;  %v56_v19 = vadd.s32 120, %v41_v2 }
  0x31   :  { %vm210_vm12 = vmpackc.low %vm68_vm11, %vm67_vm10  ;;  %vm70_vm14 = vcmp.eq.s32.totalorder %v186_v4, %v50_v13  ;;  %vm71_vm0 = vcmp.eq.s32.totalorder %v186_v4, %v51_v14  ;;  %vm72_vm1 = vcmp.eq.s32.totalorder %v186_v4, %v52_v15 }
  0x32   :  { %vm212_vm15 = vmpackc.low %vm70_vm14, %vm69_vm13  ;;  %vm73_vm3 = vcmp.eq.s32.totalorder %v186_v4, %v53_v16  ;;  %vm74_vm4 = vcmp.eq.s32.totalorder %v186_v4, %v54_v17  ;;  %vm76_vm7 = vcmp.eq.s32.totalorder %v186_v4, %v56_v19 }
  0x33   :  { %vm214_vm2 = vmpackc.low %vm72_vm1, %vm71_vm0 }
  0x34   :  { %vm216_vm5 = vmpackc.low %vm74_vm4, %vm73_vm3 }
  0x37   :  { %232 = vmatpush3.bf16.xpose.msk.msra.mxu0 %vm206_vm6, %v338_v7  ;;  %vm75_vm6 = vcmp.eq.s32.totalorder %v186_v4, %v55_v18 }
  0x38   :  { %233 = vmatprep.subr.bf16.mxu0 %v336_v1  ;;  %vm218_vm8 = vmpackc.low %vm76_vm7, %vm75_vm6 }
  0x3f   :  { %234 = vmatpush3.bf16.xpose.msk.msra.mxu0 %vm208_vm9, %v338_v7 }
  0x40   :  { %235 = vmatprep.subr.bf16.mxu0 %v336_v1 }
  0x47   :  { %236 = vmatpush3.bf16.xpose.msk.msra.mxu0 %vm210_vm12, %v338_v7 }
  0x48   :  { %237 = vmatprep.subr.bf16.mxu0 %v336_v1 }
  0x4f   :  { %238 = vmatpush3.bf16.xpose.msk.msra.mxu0 %vm212_vm15, %v338_v7 }
  0x50   :  { %239 = vmatprep.subr.bf16.mxu0 %v336_v1 }
  0x57   :  { %240 = vmatpush3.bf16.xpose.msk.msra.mxu0 %vm214_vm2, %v338_v7 }
  0x58   :  { %241 = vmatprep.subr.bf16.mxu0 %v336_v1 }
  0x5f   :  { %242 = vmatpush3.bf16.xpose.msk.msra.mxu0 %vm216_vm5, %v338_v7 }
  0x60   :  { %243 = vmatprep.subr.bf16.mxu0 %v336_v1 }
  0x67   :  { %244 = vmatpush3.bf16.xpose.msk.msra.mxu0 %vm218_vm8, %v338_v7 }
  0x6e   :  { %246 = vmatmul.mubr.bf16.vlgmr.msra.gmra.mrb[0].mxu0 %v259_v20 }
 0x141   :  { %v159_v21 = vpop.f32.mrb[0].mxu0 }
 0x142   :  { %166 = vst [vmem:[#allocation7] sm:$0xff] %v159_v21  ;;  %v247_v22 = vpop.f32.mrb[1].mxu0 }
 0x143   :  { %v162_v23 = vpop.f32.mrb[2].mxu0 }
 0x144   :  { %167 = vst [vmem:[#allocation7 + $0x8] sm:$0xff] %v162_v23  ;;  %v248_v24 = vpop.f32.mrb[3].mxu0 }
 0x145   :  { %315 = shalt.err (!%p312_p6)
}
 0x146   :  { %s316_s11 = scalar_lea.hbm %s402_s2, 256 }
 0x147   :  { %p317_p7 = scmp.ne.s32.totalorder %s402_s2, %s316_s11  ;;  %p320_p8 = scmp.lt.u32.totalorder %s316_s11, %s402_s2 }
 0x149   :  { %p322_p9 = pnand %p320_p8, %p317_p7 }
 0x14b   :  { %325 = shalt.err (!%p322_p9)
}
 0x14c   :  { %s340_s16 = smov 128   ;;  %s341_s17 = smov 8  }
 0x14d   :  { %179 = dma.vmem_to_hbm [thread:$0]  %s174_s7, 256, %s402_s2, [#allocation4], %s340_s16, %s340_s16, %s341_s17  }
 0x14e   :  { %330 = dma.done.wait [#allocation4], 256  }
 0x14f   :  { %331 = vsyncadd [#allocation4], 4294967040 }
 0x150   :  { %183 = vsyncpa [#allocation3], 1 }
 0x151   :  { %184 = vsyncpa [#allocation6], 1 }
 0x152   :  { %185 = vsyncpa [#allocation4], 1 }

</bundles_post_ra>
